<compile_context>
chip_gen: v6e
topology: v6e:2x2x1
jax: 0.10.0
libtpu: 0.0.40
codegen_flags: <defaults>
</compile_context>

<pallas_src>
import functools

import jax
import jax.numpy as jnp
import numpy as np
from jax.experimental import pallas as pl
from jax.experimental.pallas import tpu as pltpu

D_IN = 64            # interm_size[0]
D_HID = 32           # interm_size[1]
N_CLASSES = 2
BN_EPS = 1e-5
LEAKY_SLOPE = 0.01   # torch.nn.LeakyReLU default negative_slope
VEC_ROWS = 4         # packed small-parameter rows


def _round_up(x, m):
    return ((x + m - 1) // m) * m


def fnn_classifier_kernel(a_ref, vec_ref, w1_ref, w2_ref, out_ref):
    # a_ref: (TILE_B, S, D_IN)   activation block (f32 or bf16)
    # vec_ref: (4, D_IN) packed params:
    #   row 0: w_att (D_IN,)
    #   row 1: [:D_HID] = BN-folded bias of Linear(64->32)
    #   row 2: [:N_CLASSES] = bias of Linear(32->2)
    #   row 3: [0] = attention bias (scalar)
    # w1_ref: (D_IN, D_HID)  BN-folded Linear(64->32) weight (pre-transposed)
    # w2_ref: (D_HID, N_CLASSES) Linear(32->2) weight (pre-transposed)
    a3 = a_ref[...].astype(jnp.float32)                       # (TB, S, D)

    # ---- additive attention: Linear(D->1), tanh, softmax over seq, weighted sum
    w_att = vec_ref[0, :]                                     # (D,) lane vector
    b_att = vec_ref[3, 0]                                     # scalar
    scores = jnp.sum(a3 * w_att[None, None, :], axis=-1)      # lane reduce -> (TB, S)
    scores = jnp.tanh(scores + b_att)
    m = jnp.max(scores, axis=-1, keepdims=True)
    e = jnp.exp(scores - m)
    attn = e / jnp.sum(e, axis=-1, keepdims=True)             # softmax over seq
    weighted = jnp.sum(a3 * attn[:, :, None], axis=1)         # sublane reduce -> (TB, D)

    # ---- encoder: Linear(64->32) with BatchNorm folded in; Dropout == identity
    z = jnp.dot(weighted, w1_ref[...], preferred_element_type=jnp.float32)
    z = z + vec_ref[1, :D_HID][None, :]                       # (TB, 32)

    # ---- encoder1: (BN already folded) LeakyReLU, Linear(32->2)
    z = jnp.where(z > 0, z, LEAKY_SLOPE * z)
    logits = jnp.dot(z, w2_ref[...], preferred_element_type=jnp.float32)
    logits = logits + vec_ref[2, :N_CLASSES][None, :]         # (TB, 2)

    out_ref[...] = logits.astype(out_ref.dtype)


def _fold_and_pack(params):
    """Fold eval-mode BatchNorm into Linear(64->32); pack small vectors into one tile."""
    scale = params["bn_gamma"] * jax.lax.rsqrt(params["bn_var"] + BN_EPS)     # (1, 32)
    w1_f = (params["w1"] * scale).astype(jnp.float32)                          # (64, 32)
    b1_f = (params["b1"] - params["bn_mean"]) * scale + params["bn_beta"]      # (1, 32)

    vec = jnp.zeros((VEC_ROWS, D_IN), jnp.float32)
    vec = vec.at[0, :].set(params["w_att"][0].astype(jnp.float32))
    vec = vec.at[1, :D_HID].set(b1_f[0].astype(jnp.float32))
    vec = vec.at[2, :N_CLASSES].set(params["b2"][0].astype(jnp.float32))
    vec = vec.at[3, 0].set(params["b_att"][0, 0].astype(jnp.float32))
    return vec, w1_f, params["w2"].astype(jnp.float32)


@functools.partial(jax.jit, static_argnames=("tile_b", "cast_to_bf16"))
def fnn_classifier(a, params, *, tile_b=1024, cast_to_bf16=False):
    """a: (B, S, D_IN) -> logits (B, 2) float32."""
    B, S, D = a.shape
    if D != D_IN:
        raise ValueError(f"expected feature dim {D_IN}, got {D}")

    if cast_to_bf16:
        # Halve HBM->VMEM traffic for the (memory-bound) activation transfer;
        # the kernel upcasts to f32 before elementwise math.
        a = a.astype(jnp.bfloat16)

    vec, w1_f, w2 = _fold_and_pack(params)

    # Batch tiling: multiple of 8 sublanes; 2 MiB/block at the default 1024 rows
    # (double-buffered 4 MiB) -> fits every generation's scoped-VMEM default.
    tile_b = min(tile_b, _round_up(B, 8))
    tile_b = max(8, (tile_b // 8) * 8)
    b_pad = _round_up(B, tile_b)
    if b_pad != B:
        a = jnp.pad(a, ((0, b_pad - B), (0, 0), (0, 0)))

    grid = (b_pad // tile_b,)
    out = pl.pallas_call(
        fnn_classifier_kernel,
        out_shape=jax.ShapeDtypeStruct((b_pad, N_CLASSES), jnp.float32),
        grid_spec=pltpu.PrefetchScalarGridSpec(
            num_scalar_prefetch=0,
            grid=grid,
            in_specs=[
                pl.BlockSpec((tile_b, S, D_IN), lambda i: (i, 0, 0)),   # activations
                pl.BlockSpec((VEC_ROWS, D_IN), lambda i: (0, 0)),       # packed vectors
                pl.BlockSpec((D_IN, D_HID), lambda i: (0, 0)),          # folded W1
                pl.BlockSpec((D_HID, N_CLASSES), lambda i: (0, 0)),     # W2
            ],
            out_specs=pl.BlockSpec((tile_b, N_CLASSES), lambda i: (i, 0)),
        ),
        compiler_params=pltpu.CompilerParams(
            dimension_semantics=("parallel",),   # megacore sharding on v7x
        ),
    )(a, vec, w1_f, w2)
    return out[:B]


def init_params(key):
    """Deterministic init mirroring PyTorch defaults (Linear: U(-1/sqrt(fan_in), ...))."""
    ks = jax.random.split(key, 6)

    def uni(k, shape, fan_in):
        bound = 1.0 / (fan_in ** 0.5)
        return jax.random.uniform(k, shape, jnp.float32, -bound, bound)

    return dict(
        # Aditive_Attention's Linear(64 -> 1), stored as a row vector (1, 64)
        w_att=uni(ks[0], (1, D_IN), D_IN),
        b_att=uni(ks[1], (1, 1), D_IN),
        # Linear(64 -> 32), stored pre-transposed as (in, out)
        w1=uni(ks[2], (D_IN, D_HID), D_IN),
        b1=uni(ks[3], (1, D_HID), D_IN),
        # BatchNorm1d(32) defaults (replace with checkpoint stats when loading)
        bn_gamma=jnp.ones((1, D_HID), jnp.float32),
        bn_beta=jnp.zeros((1, D_HID), jnp.float32),
        bn_mean=jnp.zeros((1, D_HID), jnp.float32),
        bn_var=jnp.ones((1, D_HID), jnp.float32),
        # Linear(32 -> 2), stored pre-transposed as (in, out)
        w2=uni(ks[4], (D_HID, N_CLASSES), D_HID),
        b2=uni(ks[5], (1, N_CLASSES), D_HID),
    )


def fnn_classifier_ref(a, params):
    """float64 numpy reference for correctness check."""
    a = np.asarray(a, np.float64)
    p = {k: np.asarray(v, np.float64) for k, v in params.items()}
    scores = a @ p["w_att"][0] + p["b_att"][0, 0]          # (B, S)
    scores = np.tanh(scores)
    e = np.exp(scores - scores.max(axis=1, keepdims=True))
    attn = e / e.sum(axis=1, keepdims=True)
    weighted = np.einsum("bsd,bs->bd", a, attn)            # (B, D)
    z = weighted @ p["w1"] + p["b1"]
    inv_std = 1.0 / np.sqrt(p["bn_var"] + BN_EPS)
    z = (z - p["bn_mean"]) * inv_std * p["bn_gamma"] + p["bn_beta"]
    z = np.where(z > 0, z, LEAKY_SLOPE * z)
    return z @ p["w2"] + p["b2"]


if __name__ == "__main__":
    key = jax.random.PRNGKey(0)
    k_in, k_par = jax.random.split(key)

    # Small shapes; B=20 with tile_b=8 exercises a multi-step grid + batch padding.
    B, S = 20, 8
    A = jax.random.normal(k_in, (B, S, D_IN), jnp.float32)
    params = init_params(k_par)

    logits = fnn_classifier(A, params, tile_b=8)
    jax.block_until_ready(logits)

    assert logits.shape == (B, N_CLASSES)
    assert logits.dtype == jnp.float32

    ref = fnn_classifier_ref(A, params)
    max_err = np.max(np.abs(np.asarray(logits) - ref))
    assert np.allclose(np.asarray(logits), ref, rtol=1e-3, atol=1e-3), max_err

    # bf16 activation-transfer path (bandwidth optimization): shape/finiteness check.
    logits_bf16 = fnn_classifier(A, params, tile_b=8, cast_to_bf16=True)
    jax.block_until_ready(logits_bf16)
    assert logits_bf16.shape == (B, N_CLASSES)
    assert np.all(np.isfinite(np.asarray(logits_bf16)))

    print("KERNEL_OK")
</pallas_src>

<mosaic_0001>
module attributes {stable_mosaic.version = 11 : i64} {
  func.func @fnn_classifier_kernel(%arg0: i32, %arg1: memref<8x8x64xf32, #tpu.memory_space<vmem>>, %arg2: memref<4x64xf32, #tpu.memory_space<vmem>>, %arg3: memref<64x32xf32, #tpu.memory_space<vmem>>, %arg4: memref<32x2xf32, #tpu.memory_space<vmem>>, %arg5: memref<8x2xf32, #tpu.memory_space<vmem>>) attributes {dimension_semantics = [#tpu.dimension_semantics<parallel>], iteration_bounds = array<i64: 3>, scalar_prefetch = 0 : i64, scratch_operands = 0 : i64, tpu.core_type = #tpu.core_type<tc>, window_params = [{transform_indices = @transform_0, window_bounds = array<i64: 8, 8, 64>}, {pipeline_mode = #tpu.pipeline_mode<synchronous>, transform_indices = @transform_1, window_bounds = array<i64: 4, 64>}, {pipeline_mode = #tpu.pipeline_mode<synchronous>, transform_indices = @transform_2, window_bounds = array<i64: 64, 32>}, {pipeline_mode = #tpu.pipeline_mode<synchronous>, transform_indices = @transform_3, window_bounds = array<i64: 32, 2>}, {transform_indices = @transform_4, window_bounds = array<i64: 8, 2>}]} {
    %c0 = arith.constant 0 : index
    %c0_0 = arith.constant 0 : index
    %c0_1 = arith.constant 0 : index
    %0 = vector.load %arg1[%c0, %c0_0, %c0_1] : memref<8x8x64xf32, #tpu.memory_space<vmem>>, vector<8x8x64xf32>
    %c0_2 = arith.constant 0 : index
    %c0_3 = arith.constant 0 : index
    %1 = vector.load %arg2[%c0_2, %c0_3] : memref<4x64xf32, #tpu.memory_space<vmem>>, vector<1x64xf32>
    %2 = vector.shape_cast %1 : vector<1x64xf32> to vector<64xf32>
    %c3 = arith.constant 3 : index
    %c0_4 = arith.constant 0 : index
    %3 = vector.load %arg2[%c3, %c0_4] : memref<4x64xf32, #tpu.memory_space<vmem>>, vector<1x1xf32>
    %4 = vector.extract %3[0, 0] : f32 from vector<1x1xf32>
    %5 = vector.shape_cast %2 : vector<64xf32> to vector<1x1x64xf32>
    %6 = vector.broadcast %5 : vector<1x1x64xf32> to vector<8x8x64xf32>
    %7 = arith.mulf %0, %6 : vector<8x8x64xf32>
    %cst = arith.constant dense<0.000000e+00> : vector<8x8xf32>
    %8 = vector.multi_reduction <add>, %7, %cst [2] : vector<8x8x64xf32> to vector<8x8xf32>
    %9 = vector.broadcast %4 : f32 to vector<8x8xf32>
    %10 = arith.addf %8, %9 : vector<8x8xf32>
    %11 = math.tanh %10 : vector<8x8xf32>
    %cst_5 = arith.constant dense<0xFF800000> : vector<8xf32>
    %12 = vector.multi_reduction <maximumf>, %11, %cst_5 [1] : vector<8x8xf32> to vector<8xf32>
    %13 = vector.shape_cast %12 : vector<8xf32> to vector<8x1xf32>
    %14 = vector.broadcast %13 : vector<8x1xf32> to vector<8x8xf32>
    %15 = arith.subf %11, %14 : vector<8x8xf32>
    %16 = math.exp %15 : vector<8x8xf32>
    %cst_6 = arith.constant dense<0.000000e+00> : vector<8xf32>
    %17 = vector.multi_reduction <add>, %16, %cst_6 [1] : vector<8x8xf32> to vector<8xf32>
    %18 = vector.shape_cast %17 : vector<8xf32> to vector<8x1xf32>
    %19 = vector.broadcast %18 : vector<8x1xf32> to vector<8x8xf32>
    %20 = arith.divf %16, %19 : vector<8x8xf32>
    %21 = vector.shape_cast %20 : vector<8x8xf32> to vector<8x8x1xf32>
    %22 = vector.broadcast %21 : vector<8x8x1xf32> to vector<8x8x64xf32>
    %23 = arith.mulf %0, %22 : vector<8x8x64xf32>
    %cst_7 = arith.constant dense<0.000000e+00> : vector<8x64xf32>
    %24 = vector.multi_reduction <add>, %23, %cst_7 [1] : vector<8x8x64xf32> to vector<8x64xf32>
    %c0_8 = arith.constant 0 : index
    %c0_9 = arith.constant 0 : index
    %25 = vector.load %arg3[%c0_8, %c0_9] : memref<64x32xf32, #tpu.memory_space<vmem>>, vector<64x32xf32>
    %cst_10 = arith.constant dense<0.000000e+00> : vector<8x32xf32>
    %26 = tpu.matmul %24, %25, %cst_10 {dimension_numbers = #tpu.dot_dimension_numbers<[1], [0], [0], [1], [0, 0, 1, 1], [], []>} : vector<8x64xf32>, vector<64x32xf32>, vector<8x32xf32> -> vector<8x32xf32>
    %c1 = arith.constant 1 : index
    %c0_11 = arith.constant 0 : index
    %27 = vector.load %arg2[%c1, %c0_11] : memref<4x64xf32, #tpu.memory_space<vmem>>, vector<1x32xf32>
    %28 = vector.shape_cast %27 : vector<1x32xf32> to vector<32xf32>
    %29 = vector.shape_cast %28 : vector<32xf32> to vector<1x32xf32>
    %30 = vector.broadcast %29 : vector<1x32xf32> to vector<8x32xf32>
    %31 = arith.addf %26, %30 : vector<8x32xf32>
    %cst_12 = arith.constant 0.000000e+00 : f32
    %32 = vector.broadcast %cst_12 : f32 to vector<8x32xf32>
    %33 = arith.cmpf ogt, %31, %32 : vector<8x32xf32>
    %cst_13 = arith.constant 0.00999999977 : f32
    %34 = vector.broadcast %cst_13 : f32 to vector<8x32xf32>
    %35 = arith.mulf %34, %31 : vector<8x32xf32>
    %36 = arith.select %33, %31, %35 : vector<8x32xi1>, vector<8x32xf32>
    %c0_14 = arith.constant 0 : index
    %c0_15 = arith.constant 0 : index
    %37 = vector.load %arg4[%c0_14, %c0_15] : memref<32x2xf32, #tpu.memory_space<vmem>>, vector<32x2xf32>
    %cst_16 = arith.constant dense<0.000000e+00> : vector<8x2xf32>
    %38 = tpu.matmul %36, %37, %cst_16 {dimension_numbers = #tpu.dot_dimension_numbers<[1], [0], [0], [1], [0, 0, 1, 1], [], []>} : vector<8x32xf32>, vector<32x2xf32>, vector<8x2xf32> -> vector<8x2xf32>
    %c2 = arith.constant 2 : index
    %c0_17 = arith.constant 0 : index
    %39 = vector.load %arg2[%c2, %c0_17] : memref<4x64xf32, #tpu.memory_space<vmem>>, vector<1x2xf32>
    %40 = vector.shape_cast %39 : vector<1x2xf32> to vector<2xf32>
    %41 = vector.shape_cast %40 : vector<2xf32> to vector<1x2xf32>
    %42 = vector.broadcast %41 : vector<1x2xf32> to vector<8x2xf32>
    %43 = arith.addf %38, %42 : vector<8x2xf32>
    %c0_18 = arith.constant 0 : index
    %c0_19 = arith.constant 0 : index
    %44 = vector.load %arg5[%c0_18, %c0_19] : memref<8x2xf32, #tpu.memory_space<vmem>>, vector<8x2xf32>
    tpu.vector_store %arg5[%c0_18, %c0_19], %43 {strides = array<i32>} : memref<8x2xf32, #tpu.memory_space<vmem>>, vector<8x2xf32>,
    return
  }
  func.func @transform_0(%arg0: i32) -> (i32, i32, i32) {
    %c0_i32 = arith.constant 0 : i32
    %c0_i32_0 = arith.constant 0 : i32
    %c0_i32_1 = arith.constant 0 : i32
    return %arg0, %c0_i32, %c0_i32_0 : i32, i32, i32
  }
  func.func @transform_1(%arg0: i32) -> (i32, i32) {
    %c0_i32 = arith.constant 0 : i32
    %c0_i32_0 = arith.constant 0 : i32
    %c0_i32_1 = arith.constant 0 : i32
    return %c0_i32, %c0_i32_0 : i32, i32
  }
  func.func @transform_2(%arg0: i32) -> (i32, i32) {
    %c0_i32 = arith.constant 0 : i32
    %c0_i32_0 = arith.constant 0 : i32
    %c0_i32_1 = arith.constant 0 : i32
    return %c0_i32, %c0_i32_0 : i32, i32
  }
  func.func @transform_3(%arg0: i32) -> (i32, i32) {
    %c0_i32 = arith.constant 0 : i32
    %c0_i32_0 = arith.constant 0 : i32
    %c0_i32_1 = arith.constant 0 : i32
    return %c0_i32, %c0_i32_0 : i32, i32
  }
  func.func @transform_4(%arg0: i32) -> (i32, i32) {
    %c0_i32 = arith.constant 0 : i32
    %c0_i32_0 = arith.constant 0 : i32
    return %arg0, %c0_i32 : i32, i32
  }
}

</mosaic_0001>

<bundles_post_ra>
// kernel: fnn_classifier.1
= control target key start
LH: loop header
LB: loop body
LE: loop exit
PB: predicated region body
PF: predicated region fallthrough
CT: control target
= control target key end

     0   :  { %s1024_s15 = smov 0   ;;  %s1269_s0 = inlined_call_operand.vmem [shape: f32[24,8,64], index: 0, kind: input, shape index: {}]   ;;  %s1270_s1 = inlined_call_operand.vmem [shape: f32[4,64], index: 1, kind: input, shape index: {}]   ;;  %s1271_s2 = inlined_call_operand.vmem [shape: f32[64,32], index: 2, kind: input, shape index: {}]   ;;  %s1272_s3 = inlined_call_operand.vmem [shape: f32[32,2], index: 3, kind: input, shape index: {}]   ;;  %s1273_s4 = inlined_call_operand.vmem [shape: f32[24,2], index: 4, kind: output, shape index: {}]  }
   0x1 LB: > { %s1030_s16 = sadd.s32 4294967295, %s994_s15   ;;  %p870_p0 = scmp.ge.s32.totalorder %s994_s15, 1  ;;  %s994_s15 = sphi %s1024_s15, %s14_s15  }
   0x2   : > { %p163_p1 = scmp.lt.s32.totalorder %s994_s15, 4 }
   0x4   : > { %p164_p2 = pnand %p870_p0, %p163_p1 }
   0x5   : > { %s871_s17 = sshll.u32 (!%p164_p2), %s1030_s16, 3  ;;  %p194_p4 = scmp.lt.s32.totalorder (!%p164_p2), %s1030_s16, 2 }
   0x6   : > { %167 = sbr.rel (%p164_p2) target bundleno = 1218 (0x4c2), region = 36  ;;  %p189_p3 = scmp.lt.s32.totalorder (!%p164_p2), %s871_s17, 23 }
   0xb   : > { %v207_v0 = vld [vmem:[%s1270_s1 + $0x3] sm:$0x1]  ;;  %s1275_s17 = smov (!%p189_p3, %s871_s17), 23  ;;  %v874_v1 = vld [vmem:[%s1270_s1] ss:$0 sm:$0xff]  ;;  %vm221_vm0 = vcmask 523264   ;;  %v271_v39 = vlaneseq }
   0xc   : > { %925 = vpush %v207_v0  ;;  %s872_s20 = sshll.u32 %s1275_s17, 3  ;;  %vm305_vm1 = vcmask 1041409   ;;  %vm307_vm2 = vcmask 1042434   ;;  %vm309_vm3 = vcmask 1043459   ;;  %vm311_vm4 = vcmask 1044484   ;;  %s1277_s16 = smov (!%p194_p4, %s1030_s16), 2 }
   0xd   : > { %s192_s25 = scalar_lea.vmem %s1269_s0, %s872_s20  ;;  %v272_v44 = vand.u32 127, %v271_v39  ;;  %v1076_v45 = vshrl.u32 %v271_v39, 7  ;;  %vm313_vm5 = vcmask 1045509   ;;  %vm315_vm6 = vcmask 1046534   ;;  %s873_s29 = sshll.u32 %s1277_s16, 3 }
   0xe   : > { %v1044_v2 = vld [vmem:[%s192_s25 + $0x10] sm:$0xff]  ;;  %v1046_v3 = vld [vmem:[%s192_s25] sm:$0xff]  ;;  %v1048_v4 = vld [vmem:[%s192_s25 + $0x18] sm:$0xff]  ;;  %vm317_vm7 = vcmask 1047559   ;;  %vm320_vm8 = vcmask 64512   ;;  %vm998_vm9 = vmmov 0   ;;  %s197_s8 = scalar_lea.vmem %s1273_s4, %s873_s29 }
   0xf   : > { %v215_v5 = vmul.f32 %v874_v1, %v1044_v2  ;;  %v213_v6 = vmul.f32 %v874_v1, %v1046_v3  ;;  %v216_v7 = vmul.f32 %v874_v1, %v1048_v4  ;;  %v1053_v8 = vld [vmem:[%s192_s25 + $0x8] sm:$0xff]  ;;  %v1058_v11 = vld [vmem:[%s192_s25 + $0x20] sm:$0xff]  ;;  %v1066_v18 = vld [vmem:[%s192_s25 + $0x38] sm:$0xff]  ;;  %v1079_v47 = vsub.s32 %v272_v44, %v1076_v45 }
  0x10   : > { %v214_v9 = vmul.f32 %v874_v1, %v1053_v8  ;;  %v1056_v10 = vld [vmem:[%s192_s25 + $0x28] sm:$0xff]  ;;  %v217_v17 = vmul.f32 %v874_v1, %v1058_v11  ;;  %v1068_v19 = vld [vmem:[%s192_s25 + $0x30] sm:$0xff]  ;;  %v220_v22 = vmul.f32 %v874_v1, %v1066_v18  ;;  %v355_v39 = vsub.s32 7, %v1076_v45 }
  0x11   : > { %v228_v12 = vsel %vm221_vm0, %v215_v5, 0.0  ;;  %v222_v13 = vsel %vm221_vm0, %v213_v6, 0.0  ;;  %v231_v14 = vsel %vm221_vm0, %v216_v7, 0.0  ;;  %v218_v16 = vmul.f32 %v874_v1, %v1056_v10 }
  0x12   : > { %229 = vadd.xlane.f32.xlu1 %v228_v12  ;;  %223 = vadd.xlane.f32.xlu0 %v222_v13  ;;  %v225_v15 = vsel %vm221_vm0, %v214_v9, 0.0  ;;  %v234_v21 = vsel %vm221_vm0, %v217_v17, 0.0  ;;  %v219_v23 = vmul.f32 %v874_v1, %v1068_v19  ;;  %v243_v24 = vsel %vm221_vm0, %v220_v22, 0.0 }
  0x13   : > { %v237_v20 = vsel %vm221_vm0, %v218_v16, 0.0  ;;  %v996_v13 = vmov 0   ;;  %v335_v16 = vsub.s32 2, %v1076_v45  ;;  %v339_v17 = vsub.s32 3, %v1076_v45 }
  0x14   : > { %v240_v25 = vsel %vm221_vm0, %v219_v23, 0.0  ;;  %939 = vset.pattern.permute.xlu0 %v996_v13  ;;  %938 = vset.pattern.permute.xlu1 %v996_v13  ;;  %vm737_vm11 = vcmask 261120   ;;  %vm811_vm12 = vcmask 15360  }
  0x16   : > { %232 = vadd.xlane.f32.xlu1 %v231_v14  ;;  %226 = vadd.xlane.f32.xlu0 %v225_v15  ;;  %v327_v14 = vsub.s32 0, %v1076_v45  ;;  %v331_v15 = vsub.s32 1, %v1076_v45 }
  0x1a   : > { %238 = vadd.xlane.f32.xlu1 %v237_v20  ;;  %235 = vadd.xlane.f32.xlu0 %v234_v21 }
  0x1e   : > { %244 = vadd.xlane.f32.xlu1 %v243_v24  ;;  %241 = vadd.xlane.f32.xlu0 %v240_v25  ;;  %v343_v24 = vsub.s32 4, %v1076_v45 }
  0x3d   : > { %s926_s26 = spop %925 }
  0x3e   : > { %v246_v26 = vstv %s926_s26 }
  0x9b   : > { %v230_v27 = vpop.xlane.xlu1 %229  ;;  %v224_v28 = vpop.xlane.xlu0 %223 }
  0x9c   : > { %v249_v29 = vadd.f32 %v246_v26, %v230_v27  ;;  %v247_v30 = vadd.f32 %v246_v26, %v224_v28 }
  0x9e   : > { %940 = vtanh.f32 %v249_v29 }
  0x9f   : > { %v233_v31 = vpop.xlane.xlu1 %232  ;;  %v227_v32 = vpop.xlane.xlu0 %226  ;;  %942 = vtanh.f32 %v247_v30 }
  0xa0   : > { %v250_v33 = vadd.f32 %v246_v26, %v233_v31  ;;  %v248_v34 = vadd.f32 %v246_v26, %v227_v32  ;;  %v347_v31 = vsub.s32 5, %v1076_v45 }
  0xa2   : > { %944 = vtanh.f32 %v250_v33 }
  0xa3   : > { %946 = vtanh.f32 %v248_v34  ;;  %v239_v35 = vpop.xlane.xlu1 %238  ;;  %v236_v36 = vpop.xlane.xlu0 %235 }
  0xa4   : > { %v252_v37 = vadd.f32 %v246_v26, %v239_v35  ;;  %v251_v38 = vadd.f32 %v246_v26, %v236_v36  ;;  %v351_v35 = vsub.s32 6, %v1076_v45 }
  0xa6   : > { %948 = vtanh.f32 %v252_v37 }
  0xa7   : > { %950 = vtanh.f32 %v251_v38  ;;  %v245_v40 = vpop.xlane.xlu1 %244  ;;  %v242_v41 = vpop.xlane.xlu0 %241 }
  0xa8   : > { %v254_v42 = vadd.f32 %v246_v26, %v245_v40  ;;  %v253_v43 = vadd.f32 %v246_v26, %v242_v41 }
  0xaa   : > { %952 = vtanh.f32 %v254_v42 }
  0xab   : > { %954 = vtanh.f32 %v253_v43  ;;  %v941_v46 = vpop.eup %940 }
  0xac   : > { %v943_v48 = vpop.eup %942  ;;  %v284_v54 = vrot.slane %v941_v46, %v1079_v47 }
  0xad   : > { %v276_v51 = vrot.slane %v943_v48, %v1079_v47 }
  0xaf   : > { %v945_v49 = vpop.eup %944 }
  0xb0   : > { %v947_v50 = vpop.eup %946  ;;  %v288_v53 = vrot.slane %v945_v49, %v1079_v47 }
  0xb1   : > { %v280_v52 = vrot.slane %v947_v50, %v1079_v47 }
  0xb3   : > { %v949_v55 = vpop.eup %948  ;;  %v306_v56 = vsel %vm305_vm1, %v280_v52, %v276_v51 }
  0xb4   : > { %v951_v57 = vpop.eup %950  ;;  %v308_v58 = vsel %vm307_vm2, %v284_v54, %v306_v56  ;;  %v296_v61 = vrot.slane %v949_v55, %v1079_v47 }
  0xb5   : > { %v292_v59 = vrot.slane %v951_v57, %v1079_v47  ;;  %v310_v60 = vsel %vm309_vm3, %v288_v53, %v308_v58 }
  0xb7   : > { %v953_v62 = vpop.eup %952  ;;  %v312_v63 = vsel %vm311_vm4, %v292_v59, %v310_v60 }
  0xb8   : > { %v955_v0 = vpop.eup %954  ;;  %v304_v1 = vrot.slane %v953_v62, %v1079_v47  ;;  %v314_v6 = vsel %vm313_vm5, %v296_v61, %v312_v63 }
  0xb9   : > { %v300_v5 = vrot.slane %v955_v0, %v1079_v47 }
  0xbb   : > { %v316_v7 = vsel %vm315_vm6, %v300_v5, %v314_v6 }
  0xbc   : > { %v318_v9 = vsel %vm317_vm7, %v304_v1, %v316_v7 }
  0xbd   : > { %v321_v12 = vsel %vm320_vm8, %v318_v9, -inf }
  0xbe   : > { %322 = vmax.xlane.f32.xlu0 %v321_v12 }
 0x147   : > { %v323_v20 = vpop.xlane.xlu0 %322 }
 0x148   : > { %v328_v21 = vrot.slane %v323_v20, %v327_v14  ;;  %v332_v22 = vrot.slane %v323_v20, %v331_v15  ;;  %v336_v23 = vrot.slane %v323_v20, %v335_v16  ;;  %v340_v25 = vrot.slane %v323_v20, %v339_v17 }
 0x149   : > { %v344_v32 = vrot.slane %v323_v20, %v343_v24  ;;  %v348_v36 = vrot.slane %v323_v20, %v347_v31  ;;  %v352_v40 = vrot.slane %v323_v20, %v351_v35  ;;  %v356_v43 = vrot.slane %v323_v20, %v355_v39 }
 0x14a   : > { %v365_v26 = vsub.f32 %v943_v48, %v328_v21  ;;  %v366_v27 = vsub.f32 %v947_v50, %v332_v22  ;;  %v367_v28 = vsub.f32 %v941_v46, %v336_v23  ;;  %v368_v33 = vsub.f32 %v945_v49, %v340_v25 }
 0x14b   : > { %v369_v37 = vsub.f32 %v951_v57, %v344_v32  ;;  %v370_v41 = vsub.f32 %v949_v55, %v348_v36  ;;  %v371_v44 = vsub.f32 %v955_v0, %v352_v40  ;;  %v372_v50 = vsub.f32 %v953_v62, %v356_v43 }
 0x14c   : > { %v373_v29 = vmul.f32 1.442695, %v365_v26  ;;  %v375_v30 = vmul.f32 1.442695, %v366_v27  ;;  %v377_v34 = vmul.f32 1.442695, %v367_v28 }
 0x14d   : > { %v379_v38 = vmul.f32 1.442695, %v368_v33  ;;  %v381_v42 = vmul.f32 1.442695, %v369_v37  ;;  %v383_v46 = vmul.f32 1.442695, %v370_v41 }
 0x14e   : > { %956 = vpow2.f32 %v373_v29  ;;  %v385_v51 = vmul.f32 1.442695, %v371_v44  ;;  %v387_v53 = vmul.f32 1.442695, %v372_v50 }
 0x14f   : > { %958 = vpow2.f32 %v375_v30 }
 0x150   : > { %960 = vpow2.f32 %v377_v34 }
 0x151   : > { %962 = vpow2.f32 %v379_v38 }
 0x152   : > { %964 = vpow2.f32 %v381_v42 }
 0x153   : > { %966 = vpow2.f32 %v383_v46 }
 0x154   : > { %968 = vpow2.f32 %v385_v51 }
 0x155   : > { %970 = vpow2.f32 %v387_v53  ;;  %v632_v53 = vld [vmem:[%s1271_s2 + $0x38] sm:$0xff] }
 0x15b   : > { %v957_v48 = vpop.eup %956 }
 0x15c   : > { %v1121_v49 = vpop.eup %958  ;;  %398 = vperm.xlu1 %938, %v957_v48  }
 0x15d   : > { %401 = vperm.xlu0 %939, %v1121_v49   ;;  %v1124_v52 = vpop.eup %960 }
 0x15e   : > { %v1127_v54 = vpop.eup %962 }
 0x15f   : > { %v1130_v55 = vpop.eup %964 }
 0x160   : > { %404 = vperm.xlu1 %938, %v1124_v52   ;;  %v1133_v56 = vpop.eup %966 }
 0x161   : > { %v1136_v57 = vpop.eup %968 }
 0x162   : > { %v1139_v58 = vpop.eup %970 }
 0x164   : > { %407 = vperm.xlu1 %938, %v1127_v54  }
 0x168   : > { %410 = vperm.xlu1 %938, %v1130_v55  }
 0x16c   : > { %413 = vperm.xlu1 %938, %v1133_v56  }
 0x170   : > { %416 = vperm.xlu1 %938, %v1136_v57  }
 0x174   : > { %419 = vperm.xlu1 %938, %v1139_v58  }
 0x1d7   : > { %v399_v59 = vpop.permute.xlu1 %398 }
 0x1d8   : > { %v402_v63 = vpop.permute.xlu0 %401  ;;  %v424_v5 = vrot.slane %v399_v59, %v1079_v47  ;;  %v731_v59 = vld [vmem:[%s1272_s3 + $0x18] sm:$0xff] }
 0x1d9   : > { %v428_v1 = vrot.slane %v402_v63, %v1079_v47 }
 0x1db   : > { %v405_v60 = vpop.permute.xlu1 %404  ;;  %v453_v13 = vsel %vm305_vm1, %v428_v1, %v424_v5 }
 0x1dc   : > { %v432_v6 = vrot.slane %v405_v60, %v1079_v47  ;;  %v626_v60 = vld [vmem:[%s1271_s2 + $0x8] sm:$0xff] }
 0x1de   : > { %v454_v21 = vsel %vm307_vm2, %v432_v6, %v453_v13 }
 0x1df   : > { %v408_v61 = vpop.permute.xlu1 %407 }
 0x1e0   : > { %v436_v7 = vrot.slane %v408_v61, %v1079_v47  ;;  %v625_v61 = vld [vmem:[%s1271_s2] sm:$0xff] }
 0x1e2   : > { %v455_v23 = vsel %vm309_vm3, %v436_v7, %v454_v21 }
 0x1e3   : > { %v411_v62 = vpop.permute.xlu1 %410 }
 0x1e4   : > { %v440_v9 = vrot.slane %v411_v62, %v1079_v47 }
 0x1e6   : > { %v456_v25 = vsel %vm311_vm4, %v440_v9, %v455_v23 }
 0x1e7   : > { %v414_v0 = vpop.permute.xlu1 %413 }
 0x1e8   : > { %v444_v20 = vrot.slane %v414_v0, %v1079_v47 }
 0x1ea   : > { %v457_v27 = vsel %vm313_vm5, %v444_v20, %v456_v25 }
 0x1eb   : > { %v417_v12 = vpop.permute.xlu1 %416 }
 0x1ec   : > { %v448_v22 = vrot.slane %v417_v12, %v1079_v47 }
 0x1ee   : > { %v458_v29 = vsel %vm315_vm6, %v448_v22, %v457_v27 }
 0x1ef   : > { %v420_v26 = vpop.permute.xlu1 %419 }
 0x1f0   : > { %v452_v28 = vrot.slane %v420_v26, %v1079_v47 }
 0x1f2   : > { %v459_v30 = vsel %vm317_vm7, %v452_v28, %v458_v29 }
 0x1f3   : > { %v461_v32 = vsel %vm320_vm8, %v459_v30, 0.0 }
 0x1f4   : > { %462 = vadd.xlane.f32.xlu1 %v461_v32 }
 0x27d   : > { %v463_v33 = vpop.xlane.xlu1 %462 }
 0x27e   : > { %v468_v34 = vrot.slane %v463_v33, %v327_v14  ;;  %v472_v36 = vrot.slane %v463_v33, %v331_v15  ;;  %v476_v37 = vrot.slane %v463_v33, %v335_v16  ;;  %v480_v47 = vrot.slane %v463_v33, %v339_v17 }
 0x27f   : > { %v484_v38 = vrot.slane %v463_v33, %v343_v24  ;;  %v488_v14 = vrot.slane %v463_v33, %v347_v31  ;;  %v492_v16 = vrot.slane %v463_v33, %v351_v35  ;;  %v496_v24 = vrot.slane %v463_v33, %v355_v39 }
 0x280   : > { %972 = vrcp.f32 %v468_v34 }
 0x281   : > { %974 = vrcp.f32 %v472_v36 }
 0x282   : > { %976 = vrcp.f32 %v476_v37 }
 0x283   : > { %978 = vrcp.f32 %v480_v47 }
 0x284   : > { %980 = vrcp.f32 %v484_v38 }
 0x285   : > { %982 = vrcp.f32 %v488_v14 }
 0x286   : > { %984 = vrcp.f32 %v492_v16 }
 0x287   : > { %986 = vrcp.f32 %v496_v24 }
 0x28d   : > { %v973_v40 = vpop.eup %972 }
 0x28e   : > { %v506_v41 = vmul.f32 %v973_v40, %v957_v48  ;;  %v975_v15 = vpop.eup %974 }
 0x28f   : > { %v508_v42 = vmul.f32 %v975_v15, %v1121_v49  ;;  %v977_v17 = vpop.eup %976 }
 0x290   : > { %523 = vperm.xlu0 %939, %v506_v41   ;;  %v510_v43 = vmul.f32 %v977_v17, %v1124_v52  ;;  %v979_v44 = vpop.eup %978  ;;  %v997_v52 = vmov 0.0  }
 0x291   : > { %v512_v31 = vmul.f32 %v979_v44, %v1127_v54  ;;  %v981_v46 = vpop.eup %980  ;;  %895 = vmatprep.subr.mxu0 %v997_v52  ;;  %914 = vmatprep.subr.mxu1 %v997_v52  ;;  %v631_v54 = vld [vmem:[%s1271_s2 + $0x30] sm:$0xff] }
 0x292   : > { %v514_v35 = vmul.f32 %v981_v46, %v1130_v55  ;;  %v983_v48 = vpop.eup %982  ;;  %896 = vmatpush3.msra.mxu0 %v632_v53  ;;  %v630_v55 = vld [vmem:[%s1271_s2 + $0x28] sm:$0xff]  ;;  %911 = vmatprep.mubr.msk.f32.mxu0 %vm998_vm9, %v997_v52 }
 0x293   : > { %v516_v49 = vmul.f32 %v983_v48, %v1133_v56  ;;  %v985_v50 = vpop.eup %984  ;;  %897 = vmatprep.subr.mxu0 %v997_v52  ;;  %v629_v56 = vld [vmem:[%s1271_s2 + $0x20] sm:$0xff]  ;;  %922 = vmatprep.mubr.msk.f32.mxu1 %vm998_vm9, %v997_v52 }
 0x294   : > { %528 = vperm.xlu0 %939, %v508_v42   ;;  %v518_v45 = vmul.f32 %v985_v50, %v1136_v57  ;;  %v987_v39 = vpop.eup %986  ;;  %898 = vmatpush3.msra.mxu0 %v631_v54  ;;  %v628_v57 = vld [vmem:[%s1271_s2 + $0x18] sm:$0xff] }
 0x295   : > { %v520_v51 = vmul.f32 %v987_v39, %v1139_v58  ;;  %899 = vmatprep.subr.mxu0 %v997_v52  ;;  %v627_v58 = vld [vmem:[%s1271_s2 + $0x10] sm:$0xff]  ;;  %915 = vmatpush3.msra.mxu1 %v731_v59 }
 0x296   : > { %900 = vmatpush3.msra.mxu0 %v630_v55  ;;  %916 = vmatprep.subr.mxu1 %v997_v52 }
 0x297   : > { %901 = vmatprep.subr.mxu0 %v997_v52 }
 0x298   : > { %533 = vperm.xlu0 %939, %v510_v43   ;;  %902 = vmatpush3.msra.mxu0 %v629_v56 }
 0x299   : > { %903 = vmatprep.subr.mxu0 %v997_v52 }
 0x29a   : > { %904 = vmatpush3.msra.mxu0 %v628_v57 }
 0x29b   : > { %905 = vmatprep.subr.mxu0 %v997_v52 }
 0x29c   : > { %538 = vperm.xlu0 %939, %v512_v31   ;;  %906 = vmatpush3.msra.mxu0 %v627_v58 }
 0x29d   : > { %907 = vmatprep.subr.mxu0 %v997_v52 }
 0x29e   : > { %908 = vmatpush3.msra.mxu0 %v626_v60 }
 0x29f   : > { %909 = vmatprep.subr.mxu0 %v997_v52 }
 0x2a0   : > { %543 = vperm.xlu0 %939, %v514_v35   ;;  %910 = vmatpush3.msra.mxu0 %v625_v61 }
 0x2a4   : > { %548 = vperm.xlu0 %939, %v516_v49  }
 0x2a8   : > { %553 = vperm.xlu0 %939, %v518_v45  }
 0x2ac   : > { %558 = vperm.xlu0 %939, %v520_v51  }
 0x30b   : > { %v524_v62 = vpop.permute.xlu0 %523 }
 0x30c   : > { %v561_v5 = vmul.f32 %v524_v62, %v1046_v3 }
 0x30e   : > { %v569_v13 = vsel %vm221_vm0, %v561_v5, 0.0 }
 0x30f   : > { %v529_v63 = vpop.permute.xlu0 %528  ;;  %v570_v25 = vrot.slane %v569_v13, 4 }
 0x310   : > { %v562_v0 = vmul.f32 %v529_v63, %v1053_v8 }
 0x311   : > { %v571_v29 = vadd.f32 %v570_v25, %v569_v13 }
 0x312   : > { %v576_v7 = vsel %vm221_vm0, %v562_v0, 0.0 }
 0x313   : > { %v534_v1 = vpop.permute.xlu0 %533  ;;  %v577_v21 = vrot.slane %v576_v7, 4  ;;  %v572_v38 = vrot.slane %v571_v29, 2 }
 0x314   : > { %v563_v6 = vmul.f32 %v534_v1, %v1044_v2 }
 0x315   : > { %v578_v27 = vadd.f32 %v577_v21, %v576_v7  ;;  %v573_v43 = vadd.f32 %v572_v38, %v571_v29 }
 0x316   : > { %v583_v9 = vsel %vm221_vm0, %v563_v6, 0.0 }
 0x317   : > { %v539_v12 = vpop.permute.xlu0 %538  ;;  %v584_v22 = vrot.slane %v583_v9, 4 }
 0x318   : > { %v564_v20 = vmul.f32 %v539_v12, %v1048_v4  ;;  %v579_v4 = vrot.slane %v578_v27, 2 }
 0x319   : > { %v585_v2 = vadd.f32 %v584_v22, %v583_v9 }
 0x31a   : > { %v590_v23 = vsel %vm221_vm0, %v564_v20, 0.0  ;;  %v580_v16 = vadd.f32 %v579_v4, %v578_v27  ;;  %v728_v27 = vld [vmem:[%s1272_s3] sm:$0xff] }
 0x31b   : > { %v591_v8 = vrot.slane %v590_v23, 4  ;;  %v544_v26 = vpop.permute.xlu0 %543  ;;  %v586_v37 = vrot.slane %v585_v2, 2 }
 0x31c   : > { %v565_v3 = vmul.f32 %v544_v26, %v1058_v11  ;;  %v581_v49 = vrot.slane %v580_v16, 1  ;;  %v730_v26 = vld [vmem:[%s1272_s3 + $0x10] sm:$0xff] }
 0x31d   : > { %v592_v30 = vadd.f32 %v591_v8, %v590_v23  ;;  %v587_v17 = vadd.f32 %v586_v37, %v585_v2  ;;  %917 = vmatpush3.msra.mxu1 %v730_v26  ;;  %v875_v2 = vld [vmem:[%s1270_s1 + $0x1] ss:$0 sm:$0xff] }
 0x31e   : > { %v597_v28 = vsel %vm221_vm0, %v565_v3, 0.0  ;;  %v582_v57 = vadd.f32 %v581_v49, %v580_v16  ;;  %v729_v3 = vld [vmem:[%s1272_s3 + $0x8] sm:$0xff]  ;;  %918 = vmatprep.subr.mxu1 %v997_v52 }
 0x31f   : > { %v598_v32 = vrot.slane %v597_v28, 4  ;;  %v549_v33 = vpop.permute.xlu0 %548  ;;  %v593_v40 = vrot.slane %v592_v30, 2  ;;  %v588_v39 = vrot.slane %v587_v17, 1  ;;  %919 = vmatpush3.msra.mxu1 %v729_v3 }
 0x320   : > { %v566_v34 = vmul.f32 %v549_v33, %v1056_v10  ;;  %920 = vmatprep.subr.mxu1 %v997_v52  ;;  %v877_v52 = vld [vmem:[%s1270_s1 + $0x2] ss:$0 sm:$0xff] }
 0x321   : > { %v599_v36 = vadd.f32 %v598_v32, %v597_v28  ;;  %v594_v44 = vadd.f32 %v593_v40, %v592_v30  ;;  %v589_v61 = vadd.f32 %v588_v39, %v587_v17  ;;  %921 = vmatpush3.msra.mxu1 %v728_v27 }
 0x322   : > { %v604_v47 = vsel %vm221_vm0, %v566_v34, 0.0 }
 0x323   : > { %v605_v14 = vrot.slane %v604_v47, 4  ;;  %v554_v41 = vpop.permute.xlu0 %553  ;;  %v600_v11 = vrot.slane %v599_v36, 2  ;;  %v595_v53 = vrot.slane %v594_v44, 1 }
 0x324   : > { %v567_v15 = vmul.f32 %v554_v41, %v1068_v19  ;;  %v574_v19 = vrot.slane %v573_v43, 1 }
 0x325   : > { %v606_v42 = vadd.f32 %v605_v14, %v604_v47  ;;  %v601_v35 = vadd.f32 %v600_v11, %v599_v36  ;;  %v596_v63 = vadd.f32 %v595_v53, %v594_v44 }
 0x326   : > { %v611_v24 = vsel %vm221_vm0, %v567_v15, 0.0  ;;  %v575_v62 = vadd.f32 %v574_v19, %v573_v43 }
 0x327   : > { %v607_v10 = vrot.slane %v606_v42, 2  ;;  %v612_v31 = vrot.slane %v611_v24, 4  ;;  %v559_v46 = vpop.permute.xlu0 %558  ;;  %v602_v56 = vrot.slane %v601_v35, 1 }
 0x328   : > { %v568_v48 = vmul.f32 %v559_v46, %v1066_v18  ;;  %v646_v5 = vsel %vm305_vm1, %v582_v57, %v575_v62 }
 0x329   : > { %v608_v50 = vadd.f32 %v607_v10, %v606_v42  ;;  %v613_v45 = vadd.f32 %v612_v31, %v611_v24  ;;  %v603_v1 = vadd.f32 %v602_v56, %v601_v35  ;;  %v647_v9 = vsel %vm307_vm2, %v589_v61, %v646_v5 }
 0x32a   : > { %v618_v51 = vsel %vm221_vm0, %v568_v48, 0.0  ;;  %v648_v13 = vsel %vm309_vm3, %v596_v63, %v647_v9 }
 0x32b   : > { %v614_v54 = vrot.slane %v613_v45, 2  ;;  %v619_v55 = vrot.slane %v618_v51, 4  ;;  %v609_v58 = vrot.slane %v608_v50, 1  ;;  %v649_v21 = vsel %vm311_vm4, %v603_v1, %v648_v13 }
 0x32d   : > { %v615_v59 = vadd.f32 %v614_v54, %v613_v45  ;;  %v620_v60 = vadd.f32 %v619_v55, %v618_v51  ;;  %v610_v6 = vadd.f32 %v609_v58, %v608_v50 }
 0x32f   : > { %v616_v0 = vrot.slane %v615_v59, 1  ;;  %v621_v18 = vrot.slane %v620_v60, 2  ;;  %v650_v23 = vsel %vm313_vm5, %v610_v6, %v649_v21 }
 0x331   : > { %v622_v7 = vadd.f32 %v621_v18, %v620_v60  ;;  %v617_v12 = vadd.f32 %v616_v0, %v615_v59 }
 0x333   : > { %v623_v20 = vrot.slane %v622_v7, 1  ;;  %v651_v25 = vsel %vm315_vm6, %v617_v12, %v650_v23 }
 0x335   : > { %v624_v22 = vadd.f32 %v623_v20, %v622_v7 }
 0x337   : > { %v652_v8 = vsel %vm317_vm7, %v624_v22, %v651_v25 }
 0x338   : > { %912 = vmatmul.mubr.msk.f32.vlgmr.msra.gmra.mxu0 %vm221_vm0, %v652_v8 }
 0x3f8   : > { %v721_v28 = vpop.f32.mrf.mxu0 }
 0x3f9   : > { %v722_v29 = vadd.f32 %v875_v2, %v721_v28 }
 0x3fa   : > { %v913_v30 = vpop.f32.mrf.mxu0 }
 0x3fb   : > { %vm725_vm10 = vcmp.gt.f32.partialorder %v722_v29, 0.0  ;;  %v726_v32 = vmul.f32 0.01, %v722_v29 }
 0x3fd   : > { %v727_v33 = vsel %vm725_vm10, %v722_v29, %v726_v32 }
 0x3fe   : > { %923 = vmatmul.mubr.msk.f32.vlgmr.msra.gmra.mxu1 %vm737_vm11, %v727_v33 }
 0x4be   : > { %v807_v34 = vpop.f32.mrf.mxu1 }
 0x4bf   : > { %v808_v4 = vadd.f32 %v877_v52, %v807_v34 }
 0x4c0   : > { %v924_v36 = vpop.f32.mrf.mxu1 }
 0x4c1   : > { %812 = vst.msk [vmem:[%s197_s8] sm:$0xff] %vm811_vm12, %v808_v4 }
 0x4c2 PF: > { %s14_s15 = sadd.s32 1, %s994_s15  }
 0x4c3   : > { %p11_p5 = scmp.ge.s32.totalorder %s14_s15, 5  }
 0x4c5   :  { %13 = sbr.rel (!%p11_p5) target bundleno = 1 (0x1), region = 66 }

</bundles_post_ra>
